<compile_context>
chip_gen: v6e
topology: v6e:2x2x1
jax: 0.10.0
libtpu: 0.0.40
codegen_flags: <defaults>
</compile_context>

<pallas_src>
import jax
import jax.numpy as jnp
import numpy as np
from jax.experimental import pallas as pl
from jax.experimental.pallas import tpu as pltpu


def _round_up(a, b):
    return (a + b - 1) // b * b


def _cdiv(a, b):
    return (a + b - 1) // b


def _pick_divisor_tile(total, target, quantum):
    """Largest multiple of `quantum` <= target that divides `total`
    (falls back to `total` itself when total <= target)."""
    if total <= target:
        return total
    best = quantum
    t = quantum
    while t <= target:
        if total % t == 0:
            best = t
        t += quantum
    return best


def _vmem_capacity_bytes():
    try:
        return int(pltpu.get_tpu_info().vmem_capacity_bytes)
    except Exception:
        return 64 << 20  # conservative: v7x per-TensorCore VMEM


# ---------------------------------------------------------------------------
# Kernel 1: xw = x @ W   (row-tiled, fully parallel)
# ---------------------------------------------------------------------------
def _xw_kernel(x_ref, w_ref, xw_ref):
    xw_ref[...] = jnp.dot(
        x_ref[...], w_ref[...], preferred_element_type=jnp.float32
    ).astype(xw_ref.dtype)


# ---------------------------------------------------------------------------
# Kernel 2: out = relu( adj @ xw )   (row tiles parallel, K tiles reduced)
# ---------------------------------------------------------------------------
def _make_adj_xw_relu_kernel(tk, xw_resident):
    def kernel(adj_ref, xw_ref, out_ref, acc_ref):
        k = pl.program_id(1)

        @pl.when(k == 0)
        def _():
            acc_ref[...] = jnp.zeros_like(acc_ref)

        if xw_resident:
            # xw_ref is the whole (n_k, dout_p) array, resident in VMEM;
            # slice out the K block for this grid step.
            start = pl.multiple_of(k * tk, tk)
            xw_blk = xw_ref[pl.ds(start, tk), :]
        else:
            xw_blk = xw_ref[...]

        acc_ref[...] += jnp.dot(
            adj_ref[...], xw_blk, preferred_element_type=jnp.float32
        )

        @pl.when(k == pl.num_programs(1) - 1)
        def _():
            out_ref[...] = jnp.maximum(acc_ref[...], 0.0).astype(out_ref.dtype)

    return kernel


def graph_conv_sparse(x, weight, adj, *, tm=1024, tk=2048, compute_dtype=None):
    """relu(adj @ (x @ weight)) with Pallas TPU kernels.

    compute_dtype: dtype fed to the MXU for the adj @ xw matmul.  Defaults to
      adj.dtype (no extra cast pass; exact f32 parity).  jnp.bfloat16 halves
      the adj HBM stream but pays an extra full-HBM cast pass unless the cast
      adjacency is cached across layers (f32 accumulation either way).
    """
    n, din = x.shape
    din_w, dout = weight.shape
    assert din_w == din
    assert adj.shape == (n, n)
    out_dtype = x.dtype
    if compute_dtype is None:
        compute_dtype = adj.dtype

    # Lane-dense output: pad output_dim up to a multiple of 128.
    dout_p = _round_up(dout, 128)

    # --- row (M) tiling: split >= 2 ways when possible so the "parallel"
    # row axis can feed both TensorCores; minimize row padding (< 8*num_m).
    n8 = _round_up(n, 8)
    num_m = max(1, _cdiv(n8, tm))
    if num_m == 1 and n8 >= 16:
        num_m = 2
    tm_eff = _round_up(_cdiv(n8, num_m), 8)
    n_m = num_m * tm_eff

    # --- K tiling (adj cols / xw rows), multiple of 128, minimal padding.
    n128 = _round_up(n, 128)
    num_k = max(1, _cdiv(n128, tk))
    tk_eff = _round_up(_cdiv(n128, num_k), 128)
    n_k = num_k * tk_eff

    elt = jnp.dtype(compute_dtype).itemsize
    out_elt = jnp.dtype(out_dtype).itemsize
    vmem_cap = _vmem_capacity_bytes()

    # xw residency gate: whole xw (double-buffer-counted) within ~1/4 of VMEM
    # (16 MiB on v7x, 32 MiB on v5e/v6e).
    xw_bytes = n_k * dout_p * elt
    xw_resident = 2 * xw_bytes <= vmem_cap // 4

    # --- host-side prep: pad / cast adj ONLY when actually needed.
    adj_p = adj
    if (n_m, n_k) != (n, n):
        adj_p = jnp.pad(adj_p, ((0, n_m - n), (0, n_k - n)))
    if adj_p.dtype != compute_dtype:
        # Extra full-HBM pass; only worthwhile if reused across layers/steps.
        adj_p = adj_p.astype(compute_dtype)

    x_p = x if n_k == n else jnp.pad(x, ((0, n_k - n), (0, 0)))
    w_p = weight if dout_p == dout else jnp.pad(weight, ((0, 0), (0, dout_p - dout)))

    # ---- kernel 1: xw = x @ W (stored in compute_dtype) --------------------
    tq = _pick_divisor_tile(n_k, 1024, 128)  # big row tile: amortize step cost
    xw = pl.pallas_call(
        _xw_kernel,
        out_shape=jax.ShapeDtypeStruct((n_k, dout_p), compute_dtype),
        grid_spec=pltpu.PrefetchScalarGridSpec(
            num_scalar_prefetch=0,
            grid=(n_k // tq,),
            in_specs=[
                pl.BlockSpec((tq, din), lambda i: (i, 0)),
                pl.BlockSpec((din, dout_p), lambda i: (0, 0)),
            ],
            out_specs=pl.BlockSpec((tq, dout_p), lambda i: (i, 0)),
        ),
        compiler_params=pltpu.CompilerParams(
            dimension_semantics=("parallel",),
        ),
    )(x_p, w_p)

    # ---- kernel 2: out = relu(adj @ xw) -------------------------------------
    if xw_resident:
        xw_spec = pl.BlockSpec((n_k, dout_p), lambda i, k: (0, 0))
        xw_vmem = 2 * xw_bytes              # count double-buffer to be safe
    else:
        xw_spec = pl.BlockSpec((tk_eff, dout_p), lambda i, k: (k, 0))
        xw_vmem = 2 * tk_eff * dout_p * elt

    vmem_need = (
        2 * tm_eff * tk_eff * elt           # adj tile, double-buffered
        + xw_vmem                           # xw (resident or streamed tiles)
        + 2 * tm_eff * dout_p * out_elt     # out tile, double-buffered
        + tm_eff * dout_p * 4               # f32 accumulator scratch
    )
    # Headroom capped at ~75% of physical VMEM; never clamp below footprint.
    vmem_limit = min(max(vmem_need + (8 << 20), 16 << 20),
                     max(int(0.75 * vmem_cap), vmem_need + (2 << 20)))

    out_p = pl.pallas_call(
        _make_adj_xw_relu_kernel(tk_eff, xw_resident),
        out_shape=jax.ShapeDtypeStruct((n_m, dout_p), out_dtype),
        grid_spec=pltpu.PrefetchScalarGridSpec(
            num_scalar_prefetch=0,
            grid=(num_m, num_k),
            in_specs=[
                pl.BlockSpec((tm_eff, tk_eff), lambda i, k: (i, k)),
                xw_spec,
            ],
            out_specs=pl.BlockSpec((tm_eff, dout_p), lambda i, k: (i, 0)),
            scratch_shapes=[pltpu.VMEM((tm_eff, dout_p), jnp.float32)],
        ),
        compiler_params=pltpu.CompilerParams(
            # Row tiles independent -> "parallel" (megacore on v7x);
            # K reduction axis last, "arbitrary", with pl.when init/finalize.
            dimension_semantics=("parallel", "arbitrary"),
            vmem_limit_bytes=vmem_limit,
        ),
    )(adj_p, xw)

    if (n_m, dout_p) != (n, dout):
        return out_p[:n, :dout]
    return out_p


def glorot_init(key, input_dim, output_dim):
    """Deterministic equivalent of the torch glorot_init (uniform +/- range)."""
    init_range = np.sqrt(6.0 / (input_dim + output_dim))
    return jax.random.uniform(
        key, (input_dim, output_dim), dtype=jnp.float32,
        minval=-init_range, maxval=init_range,
    )


if __name__ == "__main__":
    key = jax.random.PRNGKey(0)

    def run_case(case_key, n, din, dout, compute_dtype, rtol, atol):
        kx, kw, ka = jax.random.split(case_key, 3)
        x = jax.random.normal(kx, (n, din), dtype=jnp.float32)
        w = glorot_init(kw, din, dout)
        # Dense (normalized-adjacency-like) matrix; sparsity structure is not
        # material to the matmul semantics.
        adj = jax.random.uniform(ka, (n, n), dtype=jnp.float32) / n
        out = jax.block_until_ready(
            graph_conv_sparse(x, w, adj, compute_dtype=compute_dtype))
        ref = jnp.maximum(adj @ (x @ w), 0.0)
        np.testing.assert_allclose(np.asarray(out), np.asarray(ref),
                                   rtol=rtol, atol=atol)

    k1, k2, k3 = jax.random.split(key, 3)

    # Aligned case (no padding, xw VMEM-resident), exact f32 path.
    run_case(k1, 256, 32, 64, None, 1e-5, 1e-5)
    # Ragged case (row / K / output-dim padding paths), exact f32 path.
    run_case(k2, 200, 20, 48, None, 1e-5, 1e-5)
    # Optional bf16 adj/xw feed (f32 accumulation) -- documented approximation.
    run_case(k3, 256, 32, 64, jnp.bfloat16, 1e-1, 1e-1)

    print("KERNEL_OK")
</pallas_src>

<mosaic_0001>
module attributes {stable_mosaic.version = 11 : i64} {
  func.func @_xw_kernel(%arg0: i32, %arg1: memref<256x32xf32, #tpu.memory_space<vmem>>, %arg2: memref<32x128xf32, #tpu.memory_space<vmem>>, %arg3: memref<256x128xf32, #tpu.memory_space<vmem>>) attributes {dimension_semantics = [#tpu.dimension_semantics<parallel>], iteration_bounds = array<i64: 1>, scalar_prefetch = 0 : i64, scratch_operands = 0 : i64, tpu.core_type = #tpu.core_type<tc>, window_params = [{transform_indices = @transform_0, window_bounds = array<i64: 256, 32>}, {pipeline_mode = #tpu.pipeline_mode<synchronous>, transform_indices = @transform_1, window_bounds = array<i64: 32, 128>}, {transform_indices = @transform_2, window_bounds = array<i64: 256, 128>}]} {
    %c0 = arith.constant 0 : index
    %c0_0 = arith.constant 0 : index
    %0 = vector.load %arg1[%c0, %c0_0] : memref<256x32xf32, #tpu.memory_space<vmem>>, vector<256x32xf32>
    %c0_1 = arith.constant 0 : index
    %c0_2 = arith.constant 0 : index
    %1 = vector.load %arg2[%c0_1, %c0_2] : memref<32x128xf32, #tpu.memory_space<vmem>>, vector<32x128xf32>
    %cst = arith.constant dense<0.000000e+00> : vector<256x128xf32>
    %2 = tpu.matmul %0, %1, %cst {dimension_numbers = #tpu.dot_dimension_numbers<[1], [0], [0], [1], [0, 0, 1, 1], [], []>} : vector<256x32xf32>, vector<32x128xf32>, vector<256x128xf32> -> vector<256x128xf32>
    %c0_3 = arith.constant 0 : index
    %c0_4 = arith.constant 0 : index
    %3 = vector.load %arg3[%c0_3, %c0_4] : memref<256x128xf32, #tpu.memory_space<vmem>>, vector<256x128xf32>
    tpu.vector_store %arg3[%c0_3, %c0_4], %2 {strides = array<i32>} : memref<256x128xf32, #tpu.memory_space<vmem>>, vector<256x128xf32>,
    return
  }
  func.func @transform_0(%arg0: i32) -> (i32, i32) {
    %c0_i32 = arith.constant 0 : i32
    %c0_i32_0 = arith.constant 0 : i32
    return %arg0, %c0_i32 : i32, i32
  }
  func.func @transform_1(%arg0: i32) -> (i32, i32) {
    %c0_i32 = arith.constant 0 : i32
    %c0_i32_0 = arith.constant 0 : i32
    %c0_i32_1 = arith.constant 0 : i32
    return %c0_i32, %c0_i32_0 : i32, i32
  }
  func.func @transform_2(%arg0: i32) -> (i32, i32) {
    %c0_i32 = arith.constant 0 : i32
    %c0_i32_0 = arith.constant 0 : i32
    return %arg0, %c0_i32 : i32, i32
  }
}

</mosaic_0001>

<bundles_post_ra>
// kernel: tpu_custom_call.1
= control target key start
LH: loop header
LB: loop body
LE: loop exit
PB: predicated region body
PF: predicated region fallthrough
CT: control target
= control target key end

     0   :  { %vm48_vm0 = vcmask 261120   ;;  %s736_s0 = inlined_call_operand.vmem [shape: f32[256,32], index: 0, kind: input, shape index: {}]   ;;  %s737_s1 = inlined_call_operand.vmem [shape: f32[32,128], index: 1, kind: input, shape index: {}]   ;;  %s738_s2 = inlined_call_operand.hbm [shape: f32[256,128], index: 2, kind: output, shape index: {}]  }
   0x1   :  { %v47_v0 = vld [vmem:[%s737_s1 + $0x18] sm:$0xff]  ;;  %v46_v1 = vld [vmem:[%s737_s1 + $0x10] sm:$0xff]  ;;  %v45_v2 = vld [vmem:[%s737_s1 + $0x8] sm:$0xff] }
   0x2   :  { %486 = vmatprep.subr.mxu0 %v47_v0  ;;  %542 = vmatprep.subr.mxu1 %v47_v0  ;;  %v44_v3 = vld [vmem:[%s737_s1] sm:$0xff]  ;;  %v13_v6 = vld [vmem:[%s736_s0 + $0x8] sm:$0xff]  ;;  %v14_v8 = vld [vmem:[%s736_s0 + $0x10] sm:$0xff] }
   0x3   :  { %487 = vmatpush3.msra.mxu0 %v47_v0  ;;  %546 = vmatpush3.msra.mxu1 %v47_v0  ;;  %v12_v4 = vld [vmem:[%s736_s0] sm:$0xff]  ;;  %v29_v7 = vld [vmem:[%s736_s0 + $0x88] sm:$0xff]  ;;  %v30_v9 = vld [vmem:[%s736_s0 + $0x90] sm:$0xff] }
   0x4   :  { %488 = vmatprep.subr.mxu0 %v46_v1  ;;  %543 = vmatprep.subr.mxu1 %v46_v1  ;;  %v28_v5 = vld [vmem:[%s736_s0 + $0x80] sm:$0xff]  ;;  %v15_v10 = vld [vmem:[%s736_s0 + $0x18] sm:$0xff] }
   0x5   :  { %489 = vmatpush3.msra.mxu0 %v46_v1  ;;  %547 = vmatpush3.msra.mxu1 %v46_v1  ;;  %v31_v11 = vld [vmem:[%s736_s0 + $0x98] sm:$0xff]  ;;  %v16_v12 = vld [vmem:[%s736_s0 + $0x20] sm:$0xff] }
   0x6   :  { %490 = vmatprep.subr.mxu0 %v45_v2  ;;  %544 = vmatprep.subr.mxu1 %v45_v2  ;;  %v32_v13 = vld [vmem:[%s736_s0 + $0xa0] sm:$0xff] }
   0x7   :  { %491 = vmatpush3.msra.mxu0 %v45_v2  ;;  %548 = vmatpush3.msra.mxu1 %v45_v2 }
   0x8   :  { %492 = vmatprep.subr.mxu0 %v44_v3  ;;  %545 = vmatprep.subr.mxu1 %v44_v3 }
   0x9   :  { %493 = vmatpush3.msra.mxu0 %v44_v3  ;;  %549 = vmatpush3.msra.mxu1 %v44_v3 }
   0xa   :  { %494 = vmatprep.mubr.msk.f32.mxu0 %vm48_vm0, %v12_v4  ;;  %518 = vmatprep.mubr.msk.f32.mxu1 %vm48_vm0, %v28_v5 }
   0xb   :  { %495 = vmatmul.mubr.msk.f32.vlgmr.msra.gmra.mxu0 %vm48_vm0, %v13_v6  ;;  %519 = vmatmul.mubr.msk.f32.vlgmr.msra.gmra.mxu1 %vm48_vm0, %v29_v7 }
   0xc   :  { %497 = vmatprep.mubr.msk.f32.mxu0 %vm48_vm0, %v14_v8  ;;  %521 = vmatprep.mubr.msk.f32.mxu1 %vm48_vm0, %v30_v9 }
   0xd   :  { %7 = vsyncpa [#allocation3], 0  ;;  %v17_v14 = vld [vmem:[%s736_s0 + $0x28] sm:$0xff]  ;;  %v18_v16 = vld [vmem:[%s736_s0 + $0x30] sm:$0xff] }
   0xe   :  { %v33_v15 = vld [vmem:[%s736_s0 + $0xa8] sm:$0xff]  ;;  %v34_v17 = vld [vmem:[%s736_s0 + $0xb0] sm:$0xff]  ;;  %v19_v18 = vld [vmem:[%s736_s0 + $0x38] sm:$0xff] }
   0xf   :  { %498 = vmatmul.mubr.msk.f32.gmra.mxu0 %vm48_vm0, %v15_v10  ;;  %522 = vmatmul.mubr.msk.f32.gmra.mxu1 %vm48_vm0, %v31_v11  ;;  %v35_v19 = vld [vmem:[%s736_s0 + $0xb8] sm:$0xff]  ;;  %v20_v20 = vld [vmem:[%s736_s0 + $0x40] sm:$0xff]  ;;  %v21_v22 = vld [vmem:[%s736_s0 + $0x48] sm:$0xff] }
  0x10   :  { %500 = vmatprep.mubr.msk.f32.mxu0 %vm48_vm0, %v16_v12  ;;  %524 = vmatprep.mubr.msk.f32.mxu1 %vm48_vm0, %v32_v13  ;;  %v36_v21 = vld [vmem:[%s736_s0 + $0xc0] sm:$0xff]  ;;  %v37_v23 = vld [vmem:[%s736_s0 + $0xc8] sm:$0xff]  ;;  %v22_v24 = vld [vmem:[%s736_s0 + $0x50] sm:$0xff] }
  0x11   :  { %v38_v25 = vld [vmem:[%s736_s0 + $0xd0] sm:$0xff]  ;;  %v23_v26 = vld [vmem:[%s736_s0 + $0x58] sm:$0xff]  ;;  %v24_v28 = vld [vmem:[%s736_s0 + $0x60] sm:$0xff] }
  0x12   :  { %v39_v27 = vld [vmem:[%s736_s0 + $0xd8] sm:$0xff]  ;;  %v40_v29 = vld [vmem:[%s736_s0 + $0xe0] sm:$0xff]  ;;  %v25_v30 = vld [vmem:[%s736_s0 + $0x68] sm:$0xff] }
  0x13   :  { %501 = vmatmul.mubr.msk.f32.gmra.mxu0 %vm48_vm0, %v17_v14  ;;  %525 = vmatmul.mubr.msk.f32.gmra.mxu1 %vm48_vm0, %v33_v15  ;;  %v41_v31 = vld [vmem:[%s736_s0 + $0xe8] sm:$0xff]  ;;  %v26_v32 = vld [vmem:[%s736_s0 + $0x70] sm:$0xff]  ;;  %v27_v34 = vld [vmem:[%s736_s0 + $0x78] sm:$0xff] }
  0x14   :  { %503 = vmatprep.mubr.msk.f32.mxu0 %vm48_vm0, %v18_v16  ;;  %527 = vmatprep.mubr.msk.f32.mxu1 %vm48_vm0, %v34_v17  ;;  %v42_v33 = vld [vmem:[%s736_s0 + $0xf0] sm:$0xff]  ;;  %v43_v35 = vld [vmem:[%s736_s0 + $0xf8] sm:$0xff]  ;;  %s575_s0 = smov [#allocation2]  }
  0x15   :  { %s407_s1 = sshll.u32 %s575_s0, 4  ;;  %s408_s1 = int_to_ptr.vmem [resolvable:$true] %s407_s1 }
  0x16   :  { %s553_s23 = scalar_lea.vmem %s408_s1, 4096  ;;  %p558_p1 = scmp.lt.s32.totalorder %s408_s1, %s408_s1 }
  0x17   :  { %504 = vmatmul.mubr.msk.f32.gmra.mxu0 %vm48_vm0, %v19_v18  ;;  %528 = vmatmul.mubr.msk.f32.gmra.mxu1 %vm48_vm0, %v35_v19  ;;  %p554_p0 = scmp.ne.s32.totalorder %s408_s1, %s553_s23  ;;  %p559_p2 = scmp.lt.s32.totalorder %s553_s23, %s553_s23 }
  0x18   :  { %506 = vmatprep.mubr.msk.f32.mxu0 %vm48_vm0, %v20_v20  ;;  %530 = vmatprep.mubr.msk.f32.mxu1 %vm48_vm0, %v36_v21 }
  0x19   :  { %p560_p3 = por %p559_p2, %p558_p1 }
  0x1b   :  { %507 = vmatmul.mubr.msk.f32.gmra.mxu0 %vm48_vm0, %v21_v22  ;;  %531 = vmatmul.mubr.msk.f32.gmra.mxu1 %vm48_vm0, %v37_v23  ;;  %p561_p4 = pnand %p560_p3, %p554_p0 }
  0x1c   :  { %509 = vmatprep.mubr.msk.f32.mxu0 %vm48_vm0, %v22_v24  ;;  %533 = vmatprep.mubr.msk.f32.mxu1 %vm48_vm0, %v38_v25 }
  0x1f   :  { %510 = vmatmul.mubr.msk.f32.gmra.mxu0 %vm48_vm0, %v23_v26  ;;  %534 = vmatmul.mubr.msk.f32.gmra.mxu1 %vm48_vm0, %v39_v27 }
  0x20   :  { %512 = vmatprep.mubr.msk.f32.mxu0 %vm48_vm0, %v24_v28  ;;  %536 = vmatprep.mubr.msk.f32.mxu1 %vm48_vm0, %v40_v29 }
  0x23   :  { %513 = vmatmul.mubr.msk.f32.gmra.mxu0 %vm48_vm0, %v25_v30  ;;  %537 = vmatmul.mubr.msk.f32.gmra.mxu1 %vm48_vm0, %v41_v31 }
  0x24   :  { %515 = vmatprep.mubr.msk.f32.mxu0 %vm48_vm0, %v26_v32  ;;  %539 = vmatprep.mubr.msk.f32.mxu1 %vm48_vm0, %v42_v33 }
  0x27   :  { %516 = vmatmul.mubr.msk.f32.gmra.mxu0 %vm48_vm0, %v27_v34  ;;  %540 = vmatmul.mubr.msk.f32.gmra.mxu1 %vm48_vm0, %v43_v35 }
  0xcb   :  { %v496_v36 = vpop.f32.mrf.mxu0  ;;  %v520_v37 = vpop.f32.mrf.mxu1 }
  0xcc   :  { %371 = vst [vmem:[#allocation2 + $0x8] sm:$0xff] %v496_v36  ;;  %387 = vst [vmem:[#allocation2 + $0x88] sm:$0xff] %v520_v37 }
  0xcd   :  { %v211_v38 = vpop.f32.mrf.mxu0  ;;  %v291_v39 = vpop.f32.mrf.mxu1 }
  0xce   :  { %370 = vst [vmem:[#allocation2] sm:$0xff] %v211_v38  ;;  %386 = vst [vmem:[#allocation2 + $0x80] sm:$0xff] %v291_v39 }
  0xcf   :  { %v499_v40 = vpop.f32.mrf.mxu0  ;;  %v523_v41 = vpop.f32.mrf.mxu1 }
  0xd0   :  { %373 = vst [vmem:[#allocation2 + $0x18] sm:$0xff] %v499_v40  ;;  %389 = vst [vmem:[#allocation2 + $0x98] sm:$0xff] %v523_v41 }
  0xd1   :  { %v221_v42 = vpop.f32.mrf.mxu0  ;;  %v301_v43 = vpop.f32.mrf.mxu1 }
  0xd2   :  { %372 = vst [vmem:[#allocation2 + $0x10] sm:$0xff] %v221_v42  ;;  %388 = vst [vmem:[#allocation2 + $0x90] sm:$0xff] %v301_v43 }
  0xd3   :  { %v502_v44 = vpop.f32.mrf.mxu0  ;;  %v526_v45 = vpop.f32.mrf.mxu1 }
  0xd4   :  { %375 = vst [vmem:[#allocation2 + $0x28] sm:$0xff] %v502_v44  ;;  %391 = vst [vmem:[#allocation2 + $0xa8] sm:$0xff] %v526_v45 }
  0xd5   :  { %v231_v46 = vpop.f32.mrf.mxu0  ;;  %v311_v47 = vpop.f32.mrf.mxu1 }
  0xd6   :  { %374 = vst [vmem:[#allocation2 + $0x20] sm:$0xff] %v231_v46  ;;  %390 = vst [vmem:[#allocation2 + $0xa0] sm:$0xff] %v311_v47 }
  0xd7   :  { %v505_v48 = vpop.f32.mrf.mxu0  ;;  %v529_v49 = vpop.f32.mrf.mxu1 }
  0xd8   :  { %377 = vst [vmem:[#allocation2 + $0x38] sm:$0xff] %v505_v48  ;;  %393 = vst [vmem:[#allocation2 + $0xb8] sm:$0xff] %v529_v49 }
  0xd9   :  { %v241_v50 = vpop.f32.mrf.mxu0  ;;  %v321_v51 = vpop.f32.mrf.mxu1 }
  0xda   :  { %376 = vst [vmem:[#allocation2 + $0x30] sm:$0xff] %v241_v50  ;;  %392 = vst [vmem:[#allocation2 + $0xb0] sm:$0xff] %v321_v51 }
  0xdb   :  { %v508_v52 = vpop.f32.mrf.mxu0  ;;  %v532_v53 = vpop.f32.mrf.mxu1 }
  0xdc   :  { %379 = vst [vmem:[#allocation2 + $0x48] sm:$0xff] %v508_v52  ;;  %395 = vst [vmem:[#allocation2 + $0xc8] sm:$0xff] %v532_v53 }
  0xdd   :  { %v251_v54 = vpop.f32.mrf.mxu0  ;;  %v331_v55 = vpop.f32.mrf.mxu1 }
  0xde   :  { %378 = vst [vmem:[#allocation2 + $0x40] sm:$0xff] %v251_v54  ;;  %394 = vst [vmem:[#allocation2 + $0xc0] sm:$0xff] %v331_v55 }
  0xdf   :  { %v511_v56 = vpop.f32.mrf.mxu0  ;;  %v535_v57 = vpop.f32.mrf.mxu1 }
  0xe0   :  { %381 = vst [vmem:[#allocation2 + $0x58] sm:$0xff] %v511_v56  ;;  %397 = vst [vmem:[#allocation2 + $0xd8] sm:$0xff] %v535_v57 }
  0xe1   :  { %v261_v58 = vpop.f32.mrf.mxu0  ;;  %v341_v59 = vpop.f32.mrf.mxu1 }
  0xe2   :  { %380 = vst [vmem:[#allocation2 + $0x50] sm:$0xff] %v261_v58  ;;  %396 = vst [vmem:[#allocation2 + $0xd0] sm:$0xff] %v341_v59 }
  0xe3   :  { %v514_v60 = vpop.f32.mrf.mxu0  ;;  %v538_v61 = vpop.f32.mrf.mxu1 }
  0xe4   :  { %383 = vst [vmem:[#allocation2 + $0x68] sm:$0xff] %v514_v60  ;;  %399 = vst [vmem:[#allocation2 + $0xe8] sm:$0xff] %v538_v61 }
  0xe5   :  { %v271_v62 = vpop.f32.mrf.mxu0  ;;  %v351_v63 = vpop.f32.mrf.mxu1 }
  0xe6   :  { %382 = vst [vmem:[#allocation2 + $0x60] sm:$0xff] %v271_v62  ;;  %398 = vst [vmem:[#allocation2 + $0xe0] sm:$0xff] %v351_v63 }
  0xe7   :  { %v517_v0 = vpop.f32.mrf.mxu0  ;;  %v541_v1 = vpop.f32.mrf.mxu1 }
  0xe8   :  { %385 = vst [vmem:[#allocation2 + $0x78] sm:$0xff] %v517_v0  ;;  %401 = vst [vmem:[#allocation2 + $0xf8] sm:$0xff] %v541_v1 }
  0xe9   :  { %v281_v2 = vpop.f32.mrf.mxu0  ;;  %v361_v3 = vpop.f32.mrf.mxu1 }
  0xea   :  { %384 = vst [vmem:[#allocation2 + $0x70] sm:$0xff] %v281_v2  ;;  %400 = vst [vmem:[#allocation2 + $0xf0] sm:$0xff] %v361_v3 }
  0xeb   :  { %564 = shalt.err (!%p561_p4)
}
  0xec   :  { %s576_s24 = smov 128   ;;  %s577_s25 = smov 8  }
  0xed   :  { %413 = dma.vmem_to_hbm [thread:$0]  %s408_s1, 4096, %s738_s2, [#allocation3], %s576_s24, %s576_s24, %s577_s25  }
  0xee   :  { %573 = dma.done.wait [#allocation3], 4096  }
  0xef   :  { %574 = vsyncadd [#allocation3], 4294963200 }
  0xf0   :  { %417 = vsyncpa [#allocation3], 1 }

</bundles_post_ra>
